<compile_context>
chip_gen: v6e
topology: v6e:2x2x1
jax: 0.10.0
libtpu: 0.0.40
codegen_flags: <defaults>
</compile_context>

<pallas_src>
import functools

import jax
import jax.numpy as jnp
from jax.experimental import pallas as pl
from jax.experimental.pallas import tpu as pltpu


def _neg_bias_value(dtype):
    dt = jnp.dtype(dtype)
    if jnp.issubdtype(dt, jnp.floating):
        # Clamp so low-precision floats (f16) do not overflow to -inf.
        return float(max(-1.0e9, float(jnp.finfo(dt).min)))
    return -1.0e9


def _mask_kernel(sim_ref, mask_ref, out_ref):
    # sim_ref:  (1, 1, TQ, LK) tile of the similarity tensor (kept in its own dtype)
    # mask_ref: (1, TQ, LK) tile of the mask (bool or int; nonzero = keep)
    sim = sim_ref[...]
    m = mask_ref[...]
    if m.dtype != jnp.bool_:
        m = m != 0
    neg = jnp.asarray(_neg_bias_value(sim.dtype), dtype=sim.dtype)
    zero = jnp.asarray(0.0, dtype=sim.dtype)
    bias = jnp.where(m, zero, neg)                      # (1, TQ, LK), sim dtype
    out_ref[...] = (sim + bias[:, None, :, :]).astype(out_ref.dtype)


def _round_up(x, m):
    return (x + m - 1) // m * m


def _vmem_limit_bytes():
    try:
        cap = int(getattr(pltpu.get_tpu_info(), "vmem_capacity_bytes", 128 << 20))
    except Exception:
        cap = 128 << 20
    # ~3/4 of physical VMEM: ~48 MiB on v7x (64 MiB phys); capped at 64 MiB on
    # v5e/v6e (128 MiB phys, where the default scoped limit is far smaller).
    return int(min((cap * 3) // 4, 64 << 20))


def _pick_tq(Lq, Lk, sim_itemsize, mask_itemsize, vmem_limit):
    # VMEM layout pads the lane axis to a multiple of 128 regardless of block shape.
    lk_vmem = _round_up(Lk, 128)
    # Per query-row, per pipeline stage: sim tile + out tile + mask tile, double-buffered.
    per_row = 2 * lk_vmem * (2 * sim_itemsize + max(1, mask_itemsize))
    budget = (vmem_limit * 3) // 4          # headroom under the scoped limit
    max_rows = max(32, budget // per_row)
    if Lq <= max_rows:
        return Lq                           # full query extent: one tile per (b, h)
    # Largest power of two <= max_rows (>= 32 keeps sublane alignment valid for
    # f32/bf16 similarity and bool/int8 masks).  Power-of-two tiles divide the
    # common sequence lengths exactly; any remainder becomes a ragged tail block
    # handled by the cdiv grid — never a wrapper-side pad.
    tq = 32
    while tq * 2 <= max_rows and tq * 2 < Lq:
        tq *= 2
    return tq


@functools.partial(jax.jit, static_argnames=("tq",))
def apply_attention_mask(similarity, mask=None, *, tq=None):
    """Pallas equivalent of ApplyAttentionMask.forward.

    similarity: [B, Lq, Lk] or [B, H, Lq, Lk] float tensor
    mask:       [B, Lq, Lk] (bool/int) or None
    tq:         optional static query-tile override (testing / tuning)
    """
    if mask is None:
        return similarity

    assert similarity.ndim in (3, 4)
    assert mask.ndim == 3

    squeeze_heads = similarity.ndim == 3
    if squeeze_heads:
        assert similarity.shape == mask.shape
        sim4 = similarity[:, None, :, :]
    else:
        assert similarity[:, 0].shape == mask.shape
        sim4 = similarity

    B, H, Lq, Lk = sim4.shape
    vmem_limit = _vmem_limit_bytes()
    sim_itemsize = jnp.dtype(sim4.dtype).itemsize
    mask_itemsize = jnp.dtype(mask.dtype).itemsize
    if tq is None:
        tq = _pick_tq(Lq, Lk, sim_itemsize, mask_itemsize, vmem_limit)
    tq = int(min(tq, Lq))

    # H innermost: the mask block index (b, qi, 0) is constant across heads, so
    # Pallas skips re-DMA of the mask tile between consecutive head iterations.
    grid = (B, pl.cdiv(Lq, tq), H)

    out = pl.pallas_call(
        _mask_kernel,
        out_shape=jax.ShapeDtypeStruct((B, H, Lq, Lk), sim4.dtype),
        grid_spec=pltpu.PrefetchScalarGridSpec(
            num_scalar_prefetch=0,
            grid=grid,
            in_specs=[
                pl.BlockSpec((1, 1, tq, Lk), lambda b, qi, h: (b, h, qi, 0)),
                pl.BlockSpec((1, tq, Lk), lambda b, qi, h: (b, qi, 0)),
            ],
            out_specs=pl.BlockSpec((1, 1, tq, Lk), lambda b, qi, h: (b, h, qi, 0)),
        ),
        compiler_params=pltpu.CompilerParams(
            # H marked "arbitrary": megacore sharding only splits the parallel
            # B / query axes across cores, preserving per-core mask-tile reuse.
            dimension_semantics=("parallel", "parallel", "arbitrary"),
            vmem_limit_bytes=vmem_limit,
        ),
        # NOTE: no input_output_aliases — similarity is a non-donated jit input,
        # and aliasing it would make XLA insert a defensive full copy of the
        # scores tensor before the kernel.
    )(sim4, mask)

    if squeeze_heads:
        out = out[:, 0, :, :]
    return out


def _reference(similarity, mask):
    if mask is None:
        return similarity
    m = mask
    if m.dtype != jnp.bool_:
        m = m != 0
    if similarity.ndim == 4:
        m = m[:, None, :, :]
    bias = jnp.where(m, 0.0, -1.0e9).astype(similarity.dtype)
    return similarity + bias


if __name__ == "__main__":
    key = jax.random.PRNGKey(0)
    k_sim, k_mask, k_sim3, k_simL, k_maskL, k_simR, k_maskR = jax.random.split(key, 7)

    # ---- small, non-128-aligned case (full-extent unaligned blocks): L = 8 ----
    B, H, L = 2, 4, 8
    similarity = jax.random.normal(k_sim, (B, H, L, L), dtype=jnp.float32)
    rand_bits = jax.random.bernoulli(k_mask, p=0.7, shape=(B, L, L))
    causal = jnp.tril(jnp.ones((L, L), dtype=bool))[None, :, :]
    mask = jnp.logical_and(rand_bits, causal)

    ref4 = _reference(similarity, mask)
    out4 = jax.block_until_ready(apply_attention_mask(similarity, mask))
    assert out4.shape == similarity.shape
    assert jnp.allclose(out4, ref4), "4D masked similarity mismatch"

    # 3D case: [batch, q_len, k_len]
    similarity3 = jax.random.normal(k_sim3, (B, L, L), dtype=jnp.float32)
    ref3 = _reference(similarity3, mask)
    out3 = jax.block_until_ready(apply_attention_mask(similarity3, mask))
    assert out3.shape == similarity3.shape
    assert jnp.allclose(out3, ref3), "3D masked similarity mismatch"

    # mask=None passthrough
    out_none = jax.block_until_ready(apply_attention_mask(similarity, None))
    assert jnp.array_equal(out_none, similarity)

    # ---- wide-int mask (nonzero "keep" values > 127: exercises the != 0 path) ----
    mask_i32 = mask.astype(jnp.int32) * 256
    ref_i32 = _reference(similarity, mask_i32)
    out_i32 = jax.block_until_ready(apply_attention_mask(similarity, mask_i32))
    assert jnp.allclose(out_i32, ref_i32), "int32 masked similarity mismatch"

    # ---- lane-dense case (L a multiple of 128): exercises unmasked store path ----
    B2, H2, L2 = 2, 4, 128
    simL = jax.random.normal(k_simL, (B2, H2, L2, L2), dtype=jnp.float32)
    randL = jax.random.bernoulli(k_maskL, p=0.7, shape=(B2, L2, L2))
    causalL = jnp.tril(jnp.ones((L2, L2), dtype=bool))[None, :, :]
    maskL = jnp.logical_and(randL, causalL)

    refL = _reference(simL, maskL)
    outL = jax.block_until_ready(apply_attention_mask(simL, maskL))
    assert jnp.allclose(outL, refL), "lane-dense masked similarity mismatch"

    # bf16 similarity: math stays in bf16 inside the kernel, output dtype preserved.
    simL_bf16 = simL.astype(jnp.bfloat16)
    refL_bf16 = _reference(simL_bf16, maskL)
    outL_bf16 = jax.block_until_ready(apply_attention_mask(simL_bf16, maskL))
    assert outL_bf16.dtype == jnp.bfloat16
    assert jnp.allclose(outL_bf16.astype(jnp.float32), refL_bf16.astype(jnp.float32),
                        rtol=1e-2, atol=1e-2), "bf16 masked similarity mismatch"

    # ---- ragged query tiling + unaligned key extent (cdiv tail block, no pad) ----
    B3, H3, Lq3, Lk3 = 2, 2, 40, 136
    simR = jax.random.normal(k_simR, (B3, H3, Lq3, Lk3), dtype=jnp.float32)
    maskR = jax.random.bernoulli(k_maskR, p=0.6, shape=(B3, Lq3, Lk3))
    refR = _reference(simR, maskR)
    outR = jax.block_until_ready(apply_attention_mask(simR, maskR, tq=32))
    assert outR.shape == simR.shape
    assert jnp.allclose(outR, refR), "ragged-tile masked similarity mismatch"

    print("KERNEL_OK")
</pallas_src>

<mosaic_0001>
module attributes {stable_mosaic.version = 11 : i64} {
  func.func @_mask_kernel(%arg0: i32, %arg1: i32, %arg2: i32, %arg3: memref<1x1x8x8xf32, #tpu.memory_space<vmem>>, %arg4: memref<1x8x8xi32, #tpu.memory_space<vmem>>, %arg5: memref<1x1x8x8xf32, #tpu.memory_space<vmem>>) attributes {dimension_semantics = [#tpu.dimension_semantics<parallel>, #tpu.dimension_semantics<parallel>, #tpu.dimension_semantics<arbitrary>], iteration_bounds = array<i64: 2, 1, 4>, scalar_prefetch = 0 : i64, scratch_operands = 0 : i64, tpu.core_type = #tpu.core_type<tc>, window_params = [{transform_indices = @transform_0, window_bounds = array<i64: 1, 1, 8, 8>}, {transform_indices = @transform_1, window_bounds = array<i64: 1, 8, 8>}, {transform_indices = @transform_2, window_bounds = array<i64: 1, 1, 8, 8>}]} {
    %c0 = arith.constant 0 : index
    %c0_0 = arith.constant 0 : index
    %c0_1 = arith.constant 0 : index
    %c0_2 = arith.constant 0 : index
    %0 = vector.load %arg3[%c0, %c0_0, %c0_1, %c0_2] : memref<1x1x8x8xf32, #tpu.memory_space<vmem>>, vector<1x1x8x8xf32>
    %c0_3 = arith.constant 0 : index
    %c0_4 = arith.constant 0 : index
    %c0_5 = arith.constant 0 : index
    %1 = vector.load %arg4[%c0_3, %c0_4, %c0_5] : memref<1x8x8xi32, #tpu.memory_space<vmem>>, vector<1x8x8xi32>
    %cst = arith.constant dense<0> : vector<1x8x8xi32>
    %2 = arith.cmpi ne, %1, %cst : vector<1x8x8xi32>
    %cst_6 = arith.constant 0.000000e+00 : f32
    %cst_7 = arith.constant -1.000000e+09 : f32
    %3 = vector.broadcast %cst_6 : f32 to vector<1x8x8xf32>
    %4 = vector.broadcast %cst_7 : f32 to vector<1x8x8xf32>
    %5 = arith.select %2, %3, %4 : vector<1x8x8xi1>, vector<1x8x8xf32>
    %6 = vector.shape_cast %5 : vector<1x8x8xf32> to vector<1x1x8x8xf32>
    %7 = arith.addf %0, %6 : vector<1x1x8x8xf32>
    %c0_8 = arith.constant 0 : index
    %c0_9 = arith.constant 0 : index
    %c0_10 = arith.constant 0 : index
    %c0_11 = arith.constant 0 : index
    %8 = vector.load %arg5[%c0_8, %c0_9, %c0_10, %c0_11] : memref<1x1x8x8xf32, #tpu.memory_space<vmem>>, vector<1x1x8x8xf32>
    tpu.vector_store %arg5[%c0_8, %c0_9, %c0_10, %c0_11], %7 {strides = array<i32>} : memref<1x1x8x8xf32, #tpu.memory_space<vmem>>, vector<1x1x8x8xf32>,
    return
  }
  func.func @transform_0(%arg0: i32, %arg1: i32, %arg2: i32) -> (i32, i32, i32, i32) {
    %c0_i32 = arith.constant 0 : i32
    %c0_i32_0 = arith.constant 0 : i32
    return %arg0, %arg2, %arg1, %c0_i32 : i32, i32, i32, i32
  }
  func.func @transform_1(%arg0: i32, %arg1: i32, %arg2: i32) -> (i32, i32, i32) {
    %c0_i32 = arith.constant 0 : i32
    %c0_i32_0 = arith.constant 0 : i32
    return %arg0, %arg1, %c0_i32 : i32, i32, i32
  }
  func.func @transform_2(%arg0: i32, %arg1: i32, %arg2: i32) -> (i32, i32, i32, i32) {
    %c0_i32 = arith.constant 0 : i32
    %c0_i32_0 = arith.constant 0 : i32
    return %arg0, %arg2, %arg1, %c0_i32 : i32, i32, i32, i32
  }
}

</mosaic_0001>

<bundles_post_ra>
// kernel: apply_attention_mask.1
= control target key start
LH: loop header
LB: loop body
LE: loop exit
PB: predicated region body
PF: predicated region fallthrough
CT: control target
= control target key end

     0   :  { %7 = vsyncpa [#allocation3], 0  ;;  %s746_s0 = inlined_call_operand.hbm [shape: f32[2,4,8,8], index: 0, kind: input, shape index: {}]   ;;  %s747_s1 = inlined_call_operand.vmem [shape: s32[2,8,8], index: 1, kind: input, shape index: {}]   ;;  %s748_s2 = inlined_call_operand.hbm [shape: f32[2,4,8,8], index: 2, kind: output, shape index: {}]  }
   0x1   :  { %9 = vsyncpa [#allocation3 + $0x1], 0 }
   0x2   :  { %10 = vsyncpa [#allocation4], 0 }
   0x3   :  { %12 = vsyncpa [#allocation4 + $0x1], 0  ;;  %s585_s9 = smov 0   ;;  %s587_s10 = smov 0  }
   0x4   :  { %s589_s11 = smov 0   ;;  %s591_s12 = smov 0  }
   0x5   :  { %s593_s13 = smov 0   ;;  %s595_s14 = smov 0  }
   0x6   :  { %s597_s15 = smov 0   ;;  %s599_s16 = smov 0  }
   0x7 LB: > { %s346_s17 = sadd.s32 4294967295, %s565_s16   ;;  %s347_s18 = sadd.s32 4294967294, %s565_s16   ;;  %s565_s16 = sphi %s599_s16, %s18_s16   ;;  %s561_s15 = sphi %s597_s15, %s761_s15   ;;  %s557_s14 = sphi %s595_s14, %s760_s14   ;;  %s553_s13 = sphi %s593_s13, %s759_s13   ;;  %s549_s12 = sphi %s591_s12, %s758_s12   ;;  %s545_s11 = sphi %s589_s11, %s757_s11   ;;  %s541_s10 = sphi %s587_s10, %s756_s10   ;;  %s537_s9 = sphi %s585_s9, %s755_s9  }
   0x8   : > { %s30_s19 = sadd.s32 1, %s557_s14  ;;  %s37_s20 = sadd.s32 1, %s561_s15 }
   0x9   : > { %p31_p0 = scmp.ge.s32.totalorder %s30_s19, 4  ;;  %s48_s21 = sadd.s32 1, %s545_s11 }
   0xa   : > { %p55_p1 = scmp.ne.s32.totalorder %s545_s11, %s541_s10  ;;  %p56_p2 = scmp.eq.s32.totalorder %s565_s16, 0 }
   0xb   : > { %s763_s19 = smov (%p31_p0, %s30_s19), 0  ;;  %s765_s20 = smov (!%p31_p0, %s37_s20), %s561_s15 }
   0xc   : > { %s42_s22 = ssub.s32 %s557_s14, %s763_s19  ;;  %p638_p3 = por %p56_p2, %p55_p1 }
   0xd   : > { %p39_p4 = scmp.ge.s32.totalorder %s765_s20, 2  ;;  %p61_p5 = scmp.ne.s32.totalorder %s541_s10, %s537_s9 }
   0xe   : > { %p62_p6 = scmp.eq.s32.totalorder %s346_s17, 0  ;;  %p117_p7 = scmp.eq.s32.totalorder %s346_s17, 7 }
   0xf   : > { %s767_s20 = smov (%p39_p4, %s765_s20), 0  ;;  %p123_p10 = scmp.eq.s32.totalorder %s347_s18, 7 }
  0x10   : > { %p646_p8 = por %p62_p6, %p61_p5  ;;  %p650_p9 = por %p117_p7, %p55_p1 }
  0x11   : > { %s41_s26 = ssub.s32 %s561_s15, %s767_s20  ;;  %p656_p12 = por %p123_p10, %p61_p5 }
  0x12   : > { %s43_s27 = sor.u32 %s42_s22, %s41_s26  ;;  %p374_p13 = scmp.lt.s32.totalorder %s565_s16, 8 }
  0x13   : > { %p46_p11 = scmp.eq.s32.totalorder %s43_s27, 0  ;;  %s143_s29 = sand.u32 1, %s545_s11  }
  0x14   : > { %s752_s28 = scalar_select %p656_p12, 1, 0 }
  0x15   : > { %s663_s30 = scalar_select %p46_p11, %s545_s11, %s48_s21  }
  0x16   : > { %s350_s3 = sshll.u32 %s143_s29, 3  ;;  %s351_s4 = sshll.u32 %s561_s15, 2 }
  0x17   : > { %s153_s5 = sadd.s32 %s557_s14, %s351_s4  ;;  %s147_s6 = scalar_lea.vmem [#allocation2], %s350_s3 }
  0x18   : > { %s157_s7 = sshll.u32 %s147_s6, 4  ;;  %s352_s8 = sshll.u32 %s153_s5, 7  ;;  %s158_s7 = int_to_ptr.vmem [resolvable:$true] %s157_s7 }
  0x19   : > { %s155_s22 = scalar_lea.hbm %s746_s0, %s352_s8  ;;  %p672_p0 = pnand %p374_p13, %p638_p3 }
  0x1a   : > { %p353_p1 = scmp.ge.s32.totalorder %s565_s16, 1  ;;  %p172_p2 = scmp.lt.s32.totalorder %s565_s16, 9 }
  0x1b   : > { %s144_s21 = scalar_lea.sflag [#allocation3], %s143_s29  ;;  %p443_p4 = pneg %p672_p0 }
  0x1c   : > { %s454_s27 = scalar_lea.vmem %s158_s7, 128  ;;  %s567_s3 = smov [#allocation2]  }
  0x1d   : > { %p455_p5 = scmp.ne.s32.totalorder %s158_s7, %s454_s27  ;;  %s459_s4 = sshll.u32 %s567_s3, 4  ;;  %s460_s4 = int_to_ptr.vmem [resolvable:$false] %s459_s4 }
  0x1e   : > { %s461_s5 = scalar_lea.vmem %s460_s4, 256  ;;  %p462_p10 = scmp.lt.s32.totalorder %s158_s7, %s460_s4 }
  0x1f   : > { %p457_p6 = pnand %p455_p5, %p443_p4  ;;  %p463_p11 = scmp.lt.s32.totalorder %s461_s5, %s454_s27 }
  0x21   : > { %p458_p7 = pneg %p457_p6  ;;  %p464_p3 = por %p463_p11, %p462_p10 }
  0x23   : > { %p465_p13 = pnand %p464_p3, %p458_p7 }
  0x25   : > { %468 = shalt.err (!%p465_p13)
}
  0x26   : > { %369 = dma.hbm_to_vmem [thread:$0]  (!%p672_p0), %s155_s22, 128, %s158_s7, %s144_s21  }
  0x27   : > { %p173_p12 = pnand %p353_p1, %p172_p2 }
  0x28   : > { %s687_s23 = sand.u32 (!%p173_p12), 1, %s541_s10  }
  0x29   : > { %176 = sbr.rel (%p173_p12) target bundleno = 74 (0x4a), region = 28  ;;  %s354_s29 = sshll.u32 (!%p173_p12), %s687_s23, 3 }
  0x2a   : > { %s179_s6 = scalar_lea.sflag (!%p173_p12), [#allocation3], %s687_s23  ;;  %s182_s8 = scalar_lea.vmem (!%p173_p12), [#allocation2], %s354_s29 }
  0x2e   : > { %528 = dma.done.wait (%p646_p8), %s179_s6, 128  }
  0x2f   : > { %530 = vsyncadd (%p646_p8), %s179_s6, 4294967168  ;;  %p210_p0 = scmp.lt.s32.totalorder %s553_s13, 1  ;;  %s358_s17 = sshll.u32 %s553_s13, 2  ;;  %v217_v0 = vld [vmem:[%s182_s8] sm:$0xff]  ;;  %v568_v2 = vmov -1e+09  }
  0x30   : > { %s237_s22 = sadd.s32 %s549_s12, %s358_s17  ;;  %s209_s3 = scalar_lea.vmem [#allocation5], %s354_s29  ;;  %vm222_vm1 = vcmask 64512  }
  0x31   : > { %s211_s7 = scalar_select %p210_p0, %s553_s13, 1 }
  0x32   : > { %s241_s24 = sshll.u32 %s209_s3, 4  ;;  %s359_s4 = sshll.u32 %s237_s22, 7  ;;  %s242_s24 = int_to_ptr.vmem [resolvable:$true] %s241_s24 }
  0x33   : > { %s356_s18 = sshll.u32 %s211_s7, 3  ;;  %s239_s12 = scalar_lea.hbm %s748_s2, %s359_s4 }
  0x34   : > { %s216_s27 = scalar_lea.vmem %s747_s1, %s356_s18  ;;  %s225_s6 = scalar_lea.sflag [#allocation4], %s687_s23 }
  0x35   : > { %v218_v1 = vld [vmem:[%s216_s27] sm:$0xff]  ;;  %s469_s7 = scalar_lea.vmem %s242_s24, 128  ;;  %s569_s29 = smov [#allocation5]  }
  0x36   : > { %vm219_vm0 = vcmp.ne.s32.totalorder %v218_v1, 0  ;;  %p470_p8 = scmp.ne.s32.totalorder %s242_s24, %s469_s7  ;;  %s473_s8 = sshll.u32 %s569_s29, 4  ;;  %s474_s8 = int_to_ptr.vmem [resolvable:$false] %s473_s8 }
  0x37   : > { %v220_v3 = vsel %vm219_vm0, 0.0, %v568_v2  ;;  %s475_s17 = scalar_lea.vmem %s474_s8, 256  ;;  %p476_p2 = scmp.lt.s32.totalorder %s242_s24, %s474_s8 }
  0x38   : > { %v221_v4 = vadd.f32 %v220_v3, %v217_v0  ;;  %p471_p12 = pnand %p470_p8, %p650_p9  ;;  %p477_p4 = scmp.lt.s32.totalorder %s475_s17, %s469_s7 }
  0x3a   : > { %223 = vst.msk [vmem:[%s209_s3] sm:$0xff] %vm222_vm1, %v221_v4  ;;  %p472_p1 = pneg %p471_p12  ;;  %p478_p5 = por %p477_p4, %p476_p2 }
  0x3c   : > { %p479_p6 = pnand %p478_p5, %p472_p1 }
  0x3e   : > { %482 = shalt.err (!%p479_p6)
}
  0x3f   : > { %s483_s18 = scalar_lea.hbm %s239_s12, 128  ;;  %s487_s26 = scalar_lea.hbm %s748_s2, 1024 }
  0x40   : > { %p484_p7 = scmp.ne.s32.totalorder %s239_s12, %s483_s18  ;;  %p488_p3 = scmp.lt.s32.totalorder %s239_s12, %s748_s2 }
  0x41   : > { %p489_p13 = scmp.lt.s32.totalorder %s487_s26, %s483_s18 }
  0x42   : > { %p485_p10 = pnand %p484_p7, %p650_p9 }
  0x43   : > { %p490_p0 = por %p489_p13, %p488_p3 }
  0x44   : > { %p486_p11 = pneg %p485_p10 }
  0x46   : > { %p491_p8 = pnand %p490_p0, %p486_p11 }
  0x48   : > { %494 = shalt.err (!%p491_p8)
}
  0x49   : > { %364 = dma.vmem_to_hbm [thread:$0]  (%p650_p9), %s242_s24, 128, %s239_s12, %s225_s6  }
  0x4a PF: > { %p375_p12 = scmp.ge.s32.totalorder %s565_s16, 2  ;;  %s253_s3 = sand.u32 1, %s537_s9  }
  0x4b   : > { %p754_p1 = scmp.ne.s32.totalorder %s752_s28, 0  ;;  %s254_s4 = scalar_lea.sflag [#allocation4], %s253_s3 }
  0x4d   : > { %p371_p2 = pnand %p375_p12, %p754_p1 }
  0x4f   : > { %p372_p4 = pneg %p371_p2 }
  0x51   : > { %532 = dma.done.wait (%p372_p4), %s254_s4, 128  }
  0x52   : > { %534 = vsyncadd (%p372_p4), %s254_s4, 4294967168  ;;  %s18_s16 = sadd.s32 1, %s565_s16   ;;  %s755_s9 = smov %s541_s10 }
  0x53   : > { %p15_p5 = scmp.ge.s32.totalorder %s18_s16, 10   ;;  %s756_s10 = smov %s545_s11 }
  0x54   : > { %s757_s11 = smov %s663_s30  ;;  %s758_s12 = smov %s557_s14 }
  0x55   : > { %s759_s13 = smov %s561_s15  ;;  %s760_s14 = smov %s763_s19 }
  0x56   : > { %s761_s15 = smov %s767_s20  ;;  %17 = sbr.rel (!%p15_p5) target bundleno = 7 (0x7), region = 76 }
  0x5b   :  { %259 = vsyncpa [#allocation3], 1 }
  0x5c   :  { %261 = vsyncpa [#allocation3 + $0x1], 1 }
  0x5d   :  { %262 = vsyncpa [#allocation4], 1 }
  0x5e   :  { %264 = vsyncpa [#allocation4 + $0x1], 1 }

</bundles_post_ra>
